<compile_context>
chip_gen: v7x
topology: tpu7x:2x2x1
jax: 0.10.0
libtpu: 0.0.40
codegen_flags: <defaults>
</compile_context>

<pallas_src>
import jax
import jax.numpy as jnp
from jax.experimental import pallas as pl
from jax.experimental.pallas import tpu as pltpu


# -----------------------------------------------------------------------------
# Kernel: 4 lane-dense matmuls, one full-block store.
# -----------------------------------------------------------------------------
def rainbow_kernel(x_ref, w1_ref, b1_ref, w2_ref, b2_ref,
                   ws_ref, bs_ref, wh_ref, bh_ref, q_ref):
    relu = lambda t: jnp.maximum(t, 0.0)

    # trunk: fc1 -> relu -> fc2 -> relu   (both (., 128) lane-dense)
    h = relu(jnp.dot(x_ref[...].astype(w1_ref.dtype), w1_ref[...],
                     preferred_element_type=jnp.float32) + b1_ref[...])
    h = relu(jnp.dot(h.astype(w2_ref.dtype), w2_ref[...],
                     preferred_element_type=jnp.float32) + b2_ref[...])
    # fused value|advantage stream: s = [v | a]  (B, 128)
    s = relu(jnp.dot(h.astype(ws_ref.dtype), ws_ref[...],
                     preferred_element_type=jnp.float32) + bs_ref[...])
    # fused head with dueling combine folded into the (f32) weights:
    # columns [0, action_dim*atoms) hold Q_flat, the rest are zero padding.
    q_ref[...] = (jnp.dot(s.astype(wh_ref.dtype), wh_ref[...],
                          preferred_element_type=jnp.float32) + bh_ref[...])


# -----------------------------------------------------------------------------
# One-time parameter packing (weight folding / lane padding), done in plain JAX.
# -----------------------------------------------------------------------------
def pack_params(params, state_dim, action_dim, atoms, dtype=jnp.float32):
    """Fold the dueling head into the weights and pad all lane dims to 128.

    `dtype` applies to trunk / fused-stream weights only (bf16 on v6e/v7x,
    f32 on v5e).  The folded head weights stay f32 so the exact per-action
    mean cancellation is preserved; biases stay f32.
    """
    (w1, b1), (w2, b2), (wv1, bv1), (wv, bv), (wa1, ba1), (wa, ba) = params
    H1, H2, HS = 64, 128, 64
    na = action_dim * atoms
    n_pad = max(128, ((na + 127) // 128) * 128)

    # fc1: pad output 64 -> 128 (extra columns are exact zeros -> relu -> 0)
    w1p = jnp.zeros((state_dim, H2), jnp.float32).at[:, :H1].set(w1)
    b1p = jnp.zeros((1, H2), jnp.float32).at[:, :H1].set(b1)
    # fc2: pad input 64 -> 128 with zero rows (they meet the zero columns above)
    w2p = jnp.zeros((H2, H2), jnp.float32).at[:H1, :].set(w2)
    b2p = b2                                            # (1, 128)
    # fused streams: s = [v | a]
    wsp = jnp.concatenate([wv1, wa1], axis=1)           # (128, 128)
    bsp = jnp.concatenate([bv1, ba1], axis=1)           # (1, 128)
    # fused head + dueling combine:
    #   Q[:, j, k] = V[:, k] + A[:, j, k] - mean_j' A[:, j', k]
    # is affine in s = [v | a]; fold it into a single (128, n_pad) weight.
    wv_rep = jnp.broadcast_to(wv[:, None, :], (HS, action_dim, atoms)
                              ).reshape(HS, na)
    wa3 = wa.reshape(HS, action_dim, atoms)
    wa_c = (wa3 - wa3.mean(axis=1, keepdims=True)).reshape(HS, na)
    w_head = jnp.concatenate([wv_rep, wa_c], axis=0)    # (128, na)
    ba3 = ba.reshape(1, action_dim, atoms)
    b_head = (bv[:, None, :] + (ba3 - ba3.mean(axis=1, keepdims=True))
              ).reshape(1, na)
    whp = jnp.zeros((H2, n_pad), jnp.float32).at[:, :na].set(w_head)
    bhp = jnp.zeros((1, n_pad), jnp.float32).at[:, :na].set(b_head)

    # Trunk/stream weights optionally bf16 (MXU-native on v6e/v7x); the folded
    # head weights stay f32 (exact dueling-mean cancellation); biases stay f32.
    return (w1p.astype(dtype), b1p, w2p.astype(dtype), b2p,
            wsp.astype(dtype), bsp, whp, bhp)


# -----------------------------------------------------------------------------
# Wrapper: single-block fast path (no batch pad/slice) or a batch grid.
# -----------------------------------------------------------------------------
def rainbow_forward(x, packed, action_dim, atoms, *,
                    batch_block=None, single_block_cap=1024):
    """Run the fused forward.

    Default (batch_block=None, B <= single_block_cap): a single grid step whose
    block shapes equal the full arrays -> no host-side batch padding and no
    batch slicing of the output (review item #1, best for 1-TC v5e/v6e).

    batch_block=k (or B > cap): grid over the batch with blocks rounded to a
    multiple of 256 rows (MXU row count on v6e/v7x); with two balanced blocks
    this shards across v7x's 2 TensorCores via dimension_semantics="parallel".
    """
    B, state_dim = x.shape
    na = action_dim * atoms
    n_pad = packed[6].shape[1]

    if batch_block is None and B <= single_block_cap:
        # single grid step: blocks == full arrays (no pad, no batch slice)
        bb, Bp = B, B
        xp = x
    else:
        bb = 512 if batch_block is None else batch_block
        bb = max(256, ((bb + 255) // 256) * 256)   # MXU-row multiple (v6e/v7x)
        bb = min(bb, 2048)                          # keep trunk vreg-resident
        Bp = ((B + bb - 1) // bb) * bb
        xp = x if Bp == B else jnp.zeros((Bp, state_dim), x.dtype).at[:B].set(x)

    def wspec(a):
        # weights/biases: whole array, VMEM-resident across grid steps.
        # (pipeline_mode=pl.Buffered(1) would single-buffer them; not needed
        #  at this footprint, kept default for portability.)
        return pl.BlockSpec(a.shape, lambda i: (0, 0))

    in_specs = [pl.BlockSpec((bb, state_dim), lambda i: (i, 0))] + \
               [wspec(a) for a in packed]
    out_spec = pl.BlockSpec((bb, n_pad), lambda i: (i, 0))

    q_pad = pl.pallas_call(
        rainbow_kernel,
        out_shape=jax.ShapeDtypeStruct((Bp, n_pad), jnp.float32),
        grid=(Bp // bb,),
        in_specs=in_specs,
        out_specs=out_spec,
        compiler_params=pltpu.CompilerParams(
            dimension_semantics=("parallel",)),
    )(xp, *packed)

    if Bp != B:
        q_pad = q_pad[:B]
    # drop lane padding and present the (B, action_dim, atoms) view (glue)
    return q_pad[:, :na].reshape(B, action_dim, atoms)


# -----------------------------------------------------------------------------
# Synthetic parameters + pure-JAX reference
# -----------------------------------------------------------------------------
def init_noisy_linear(key, in_features, out_features, sigma_init=0.5):
    """Deterministic synthetic NoisyLinear: fold mu + sigma*eps into W_eff."""
    k_mu_w, k_eps_in, k_eps_out, k_mu_b = jax.random.split(key, 4)
    bound = 1.0 / jnp.sqrt(jnp.float32(in_features))
    w_mu = jax.random.uniform(k_mu_w, (in_features, out_features), jnp.float32,
                              minval=-bound, maxval=bound)
    b_mu = jax.random.uniform(k_mu_b, (1, out_features), jnp.float32,
                              minval=-bound, maxval=bound)
    w_sigma = jnp.full((in_features, out_features),
                       sigma_init / jnp.sqrt(jnp.float32(in_features)),
                       jnp.float32)
    b_sigma = jnp.full((1, out_features),
                       sigma_init / jnp.sqrt(jnp.float32(in_features)),
                       jnp.float32)
    f = lambda t: jnp.sign(t) * jnp.sqrt(jnp.abs(t))
    eps_in = f(jax.random.normal(k_eps_in, (in_features,), jnp.float32))
    eps_out = f(jax.random.normal(k_eps_out, (out_features,), jnp.float32))
    w_eff = w_mu + w_sigma * (eps_in[:, None] * eps_out[None, :])
    b_eff = b_mu + b_sigma * eps_out[None, :]
    return w_eff, b_eff


def reference_forward(x, params, action_dim, atoms):
    (w1, b1), (w2, b2), (wv1, bv1), (wv, bv), (wa1, ba1), (wa, ba) = params
    relu = lambda t: jnp.maximum(t, 0.0)
    h = relu(x @ w1 + b1)
    h = relu(h @ w2 + b2)
    V = relu(h @ wv1 + bv1) @ wv + bv
    A = (relu(h @ wa1 + ba1) @ wa + ba).reshape(-1, action_dim, atoms)
    return V[:, None, :] + (A - A.mean(axis=1, keepdims=True))


if __name__ == "__main__":
    B, state_dim, action_dim, atoms = 4, 32, 4, 8

    root = jax.random.PRNGKey(0)
    kx, kx2, k1, k2, k3, k4, k5, k6 = jax.random.split(root, 8)

    x = jax.random.normal(kx, (B, state_dim), jnp.float32)

    params = [
        init_noisy_linear(k1, state_dim, 64),            # fc1
        init_noisy_linear(k2, 64, 128),                  # fc2
        init_noisy_linear(k3, 128, 64),                  # V_stream
        init_noisy_linear(k4, 64, atoms),                # V
        init_noisy_linear(k5, 128, 64),                  # A_stream
        init_noisy_linear(k6, 64, action_dim * atoms),   # A
    ]

    # ---- small batch, single grid step, no batch pad/slice, f32 (gate) ----
    packed = pack_params(params, state_dim, action_dim, atoms)
    q = jax.block_until_ready(rainbow_forward(x, packed, action_dim, atoms))
    q_ref = reference_forward(x, params, action_dim, atoms)
    assert q.shape == (B, action_dim, atoms)
    assert jnp.allclose(q, q_ref, atol=1e-4, rtol=1e-4)

    # ---- larger batch, two 256-row "parallel" blocks (v7x 2-TC friendly) ----
    B2 = 512
    x2 = jax.random.normal(kx2, (B2, state_dim), jnp.float32)
    q2 = jax.block_until_ready(
        rainbow_forward(x2, packed, action_dim, atoms, batch_block=256))
    q2_ref = reference_forward(x2, params, action_dim, atoms)
    assert jnp.allclose(q2, q2_ref, atol=1e-4, rtol=1e-4)

    # ---- bf16 trunk weights (v6e/v7x), head kept f32 — tolerance test ----
    packed_bf16 = pack_params(params, state_dim, action_dim, atoms,
                              dtype=jnp.bfloat16)
    q3 = jax.block_until_ready(
        rainbow_forward(x, packed_bf16, action_dim, atoms))
    err = jnp.max(jnp.abs(q3 - q_ref))
    scale = jnp.max(jnp.abs(q_ref))
    assert bool(jnp.all(jnp.isfinite(q3)))
    assert float(err) <= 0.05 * float(scale) + 0.02

    print("KERNEL_OK")
</pallas_src>

<mosaic_0001>
module attributes {stable_mosaic.version = 11 : i64} {
  func.func @rainbow_kernel(%arg0: i32, %arg1: memref<4x32xf32, #tpu.memory_space<vmem>>, %arg2: memref<32x128xf32, #tpu.memory_space<vmem>>, %arg3: memref<1x128xf32, #tpu.memory_space<vmem>>, %arg4: memref<128x128xf32, #tpu.memory_space<vmem>>, %arg5: memref<1x128xf32, #tpu.memory_space<vmem>>, %arg6: memref<128x128xf32, #tpu.memory_space<vmem>>, %arg7: memref<1x128xf32, #tpu.memory_space<vmem>>, %arg8: memref<128x128xf32, #tpu.memory_space<vmem>>, %arg9: memref<1x128xf32, #tpu.memory_space<vmem>>, %arg10: memref<4x128xf32, #tpu.memory_space<vmem>>) attributes {dimension_semantics = [#tpu.dimension_semantics<parallel>], iteration_bounds = array<i64: 1>, scalar_prefetch = 0 : i64, scratch_operands = 0 : i64, tpu.core_type = #tpu.core_type<tc>, window_params = [{transform_indices = @transform_0, window_bounds = array<i64: 4, 32>}, {pipeline_mode = #tpu.pipeline_mode<synchronous>, transform_indices = @transform_1, window_bounds = array<i64: 32, 128>}, {pipeline_mode = #tpu.pipeline_mode<synchronous>, transform_indices = @transform_2, window_bounds = array<i64: 1, 128>}, {pipeline_mode = #tpu.pipeline_mode<synchronous>, transform_indices = @transform_3, window_bounds = array<i64: 128, 128>}, {pipeline_mode = #tpu.pipeline_mode<synchronous>, transform_indices = @transform_4, window_bounds = array<i64: 1, 128>}, {pipeline_mode = #tpu.pipeline_mode<synchronous>, transform_indices = @transform_5, window_bounds = array<i64: 128, 128>}, {pipeline_mode = #tpu.pipeline_mode<synchronous>, transform_indices = @transform_6, window_bounds = array<i64: 1, 128>}, {pipeline_mode = #tpu.pipeline_mode<synchronous>, transform_indices = @transform_7, window_bounds = array<i64: 128, 128>}, {pipeline_mode = #tpu.pipeline_mode<synchronous>, transform_indices = @transform_8, window_bounds = array<i64: 1, 128>}, {transform_indices = @transform_9, window_bounds = array<i64: 4, 128>}]} {
    %c0 = arith.constant 0 : index
    %c0_0 = arith.constant 0 : index
    %0 = vector.load %arg1[%c0, %c0_0] : memref<4x32xf32, #tpu.memory_space<vmem>>, vector<4x32xf32>
    %c0_1 = arith.constant 0 : index
    %c0_2 = arith.constant 0 : index
    %1 = vector.load %arg2[%c0_1, %c0_2] : memref<32x128xf32, #tpu.memory_space<vmem>>, vector<32x128xf32>
    %cst = arith.constant dense<0.000000e+00> : vector<4x128xf32>
    %2 = tpu.matmul %0, %1, %cst {dimension_numbers = #tpu.dot_dimension_numbers<[1], [0], [0], [1], [0, 0, 1, 1], [], []>} : vector<4x32xf32>, vector<32x128xf32>, vector<4x128xf32> -> vector<4x128xf32>
    %c0_3 = arith.constant 0 : index
    %c0_4 = arith.constant 0 : index
    %3 = vector.load %arg3[%c0_3, %c0_4] : memref<1x128xf32, #tpu.memory_space<vmem>>, vector<1x128xf32>
    %4 = vector.broadcast %3 : vector<1x128xf32> to vector<4x128xf32>
    %5 = arith.addf %2, %4 : vector<4x128xf32>
    %cst_5 = arith.constant 0.000000e+00 : f32
    %6 = vector.broadcast %cst_5 : f32 to vector<4x128xf32>
    %7 = arith.maximumf %5, %6 : vector<4x128xf32>
    %c0_6 = arith.constant 0 : index
    %c0_7 = arith.constant 0 : index
    %8 = vector.load %arg4[%c0_6, %c0_7] : memref<128x128xf32, #tpu.memory_space<vmem>>, vector<128x128xf32>
    %cst_8 = arith.constant dense<0.000000e+00> : vector<4x128xf32>
    %9 = tpu.matmul %7, %8, %cst_8 {dimension_numbers = #tpu.dot_dimension_numbers<[1], [0], [0], [1], [0, 0, 1, 1], [], []>} : vector<4x128xf32>, vector<128x128xf32>, vector<4x128xf32> -> vector<4x128xf32>
    %c0_9 = arith.constant 0 : index
    %c0_10 = arith.constant 0 : index
    %10 = vector.load %arg5[%c0_9, %c0_10] : memref<1x128xf32, #tpu.memory_space<vmem>>, vector<1x128xf32>
    %11 = vector.broadcast %10 : vector<1x128xf32> to vector<4x128xf32>
    %12 = arith.addf %9, %11 : vector<4x128xf32>
    %cst_11 = arith.constant 0.000000e+00 : f32
    %13 = vector.broadcast %cst_11 : f32 to vector<4x128xf32>
    %14 = arith.maximumf %12, %13 : vector<4x128xf32>
    %c0_12 = arith.constant 0 : index
    %c0_13 = arith.constant 0 : index
    %15 = vector.load %arg6[%c0_12, %c0_13] : memref<128x128xf32, #tpu.memory_space<vmem>>, vector<128x128xf32>
    %cst_14 = arith.constant dense<0.000000e+00> : vector<4x128xf32>
    %16 = tpu.matmul %14, %15, %cst_14 {dimension_numbers = #tpu.dot_dimension_numbers<[1], [0], [0], [1], [0, 0, 1, 1], [], []>} : vector<4x128xf32>, vector<128x128xf32>, vector<4x128xf32> -> vector<4x128xf32>
    %c0_15 = arith.constant 0 : index
    %c0_16 = arith.constant 0 : index
    %17 = vector.load %arg7[%c0_15, %c0_16] : memref<1x128xf32, #tpu.memory_space<vmem>>, vector<1x128xf32>
    %18 = vector.broadcast %17 : vector<1x128xf32> to vector<4x128xf32>
    %19 = arith.addf %16, %18 : vector<4x128xf32>
    %cst_17 = arith.constant 0.000000e+00 : f32
    %20 = vector.broadcast %cst_17 : f32 to vector<4x128xf32>
    %21 = arith.maximumf %19, %20 : vector<4x128xf32>
    %c0_18 = arith.constant 0 : index
    %c0_19 = arith.constant 0 : index
    %22 = vector.load %arg8[%c0_18, %c0_19] : memref<128x128xf32, #tpu.memory_space<vmem>>, vector<128x128xf32>
    %cst_20 = arith.constant dense<0.000000e+00> : vector<4x128xf32>
    %23 = tpu.matmul %21, %22, %cst_20 {dimension_numbers = #tpu.dot_dimension_numbers<[1], [0], [0], [1], [0, 0, 1, 1], [], []>} : vector<4x128xf32>, vector<128x128xf32>, vector<4x128xf32> -> vector<4x128xf32>
    %c0_21 = arith.constant 0 : index
    %c0_22 = arith.constant 0 : index
    %24 = vector.load %arg9[%c0_21, %c0_22] : memref<1x128xf32, #tpu.memory_space<vmem>>, vector<1x128xf32>
    %25 = vector.broadcast %24 : vector<1x128xf32> to vector<4x128xf32>
    %26 = arith.addf %23, %25 : vector<4x128xf32>
    %c0_23 = arith.constant 0 : index
    %c0_24 = arith.constant 0 : index
    %27 = vector.load %arg10[%c0_23, %c0_24] : memref<4x128xf32, #tpu.memory_space<vmem>>, vector<4x128xf32>
    tpu.vector_store %arg10[%c0_23, %c0_24], %26 {strides = array<i32>} : memref<4x128xf32, #tpu.memory_space<vmem>>, vector<4x128xf32>,
    return
  }
  func.func @transform_0(%arg0: i32) -> (i32, i32) {
    %c0_i32 = arith.constant 0 : i32
    %c0_i32_0 = arith.constant 0 : i32
    return %arg0, %c0_i32 : i32, i32
  }
  func.func @transform_1(%arg0: i32) -> (i32, i32) {
    %c0_i32 = arith.constant 0 : i32
    %c0_i32_0 = arith.constant 0 : i32
    %c0_i32_1 = arith.constant 0 : i32
    return %c0_i32, %c0_i32_0 : i32, i32
  }
  func.func @transform_2(%arg0: i32) -> (i32, i32) {
    %c0_i32 = arith.constant 0 : i32
    %c0_i32_0 = arith.constant 0 : i32
    %c0_i32_1 = arith.constant 0 : i32
    return %c0_i32, %c0_i32_0 : i32, i32
  }
  func.func @transform_3(%arg0: i32) -> (i32, i32) {
    %c0_i32 = arith.constant 0 : i32
    %c0_i32_0 = arith.constant 0 : i32
    %c0_i32_1 = arith.constant 0 : i32
    return %c0_i32, %c0_i32_0 : i32, i32
  }
  func.func @transform_4(%arg0: i32) -> (i32, i32) {
    %c0_i32 = arith.constant 0 : i32
    %c0_i32_0 = arith.constant 0 : i32
    %c0_i32_1 = arith.constant 0 : i32
    return %c0_i32, %c0_i32_0 : i32, i32
  }
  func.func @transform_5(%arg0: i32) -> (i32, i32) {
    %c0_i32 = arith.constant 0 : i32
    %c0_i32_0 = arith.constant 0 : i32
    %c0_i32_1 = arith.constant 0 : i32
    return %c0_i32, %c0_i32_0 : i32, i32
  }
  func.func @transform_6(%arg0: i32) -> (i32, i32) {
    %c0_i32 = arith.constant 0 : i32
    %c0_i32_0 = arith.constant 0 : i32
    %c0_i32_1 = arith.constant 0 : i32
    return %c0_i32, %c0_i32_0 : i32, i32
  }
  func.func @transform_7(%arg0: i32) -> (i32, i32) {
    %c0_i32 = arith.constant 0 : i32
    %c0_i32_0 = arith.constant 0 : i32
    %c0_i32_1 = arith.constant 0 : i32
    return %c0_i32, %c0_i32_0 : i32, i32
  }
  func.func @transform_8(%arg0: i32) -> (i32, i32) {
    %c0_i32 = arith.constant 0 : i32
    %c0_i32_0 = arith.constant 0 : i32
    %c0_i32_1 = arith.constant 0 : i32
    return %c0_i32, %c0_i32_0 : i32, i32
  }
  func.func @transform_9(%arg0: i32) -> (i32, i32) {
    %c0_i32 = arith.constant 0 : i32
    %c0_i32_0 = arith.constant 0 : i32
    return %arg0, %c0_i32 : i32, i32
  }
}

</mosaic_0001>

<bundles_post_ra>
// kernel: tpu_custom_call.1
= control target key start
LH: loop header
LB: loop body
LE: loop exit
PB: predicated region body
PF: predicated region fallthrough
CT: control target
= control target key end

     0   :  { %14 = vsyncpa [#allocation3], 0  ;;  %s1082_s0 = inlined_call_operand.hbm [shape: f32[4,32], index: 0, kind: input, shape index: {}]   ;;  %s1083_s1 = inlined_call_operand.hbm [shape: f32[32,128], index: 1, kind: input, shape index: {}]   ;;  %s1084_s2 = inlined_call_operand.vmem [shape: f32[1,128], index: 2, kind: input, shape index: {}]   ;;  %s1085_s3 = inlined_call_operand.hbm [shape: f32[128,128], index: 3, kind: input, shape index: {}]   ;;  %s1086_s4 = inlined_call_operand.vmem [shape: f32[1,128], index: 4, kind: input, shape index: {}]   ;;  %s1087_s5 = inlined_call_operand.hbm [shape: f32[128,128], index: 5, kind: input, shape index: {}]   ;;  %s1088_s6 = inlined_call_operand.vmem [shape: f32[1,128], index: 6, kind: input, shape index: {}]   ;;  %s1089_s7 = inlined_call_operand.hbm [shape: f32[128,128], index: 7, kind: input, shape index: {}]   ;;  %s1090_s8 = inlined_call_operand.vmem [shape: f32[1,128], index: 8, kind: input, shape index: {}]   ;;  %s1091_s9 = inlined_call_operand.hbm [shape: f32[4,128], index: 9, kind: output, shape index: {}]  }
   0x1   :  { %15 = vsyncpa [#allocation6], 0 }
   0x2   :  { %16 = vsyncpa [#allocation9], 0 }
   0x3   :  { %17 = vsyncpa [#allocation4], 0  ;;  %s891_s30 = smov [#allocation5]   ;;  %s751_s13 = scalar_lea.hbm %s1083_s1, 512 }
   0x4   :  { %s33_s10 = sshll.u32 %s891_s30, 4  ;;  %p752_p0 = scmp.ne.s32.totalorder %s1083_s1, %s751_s13  ;;  %s34_s10 = int_to_ptr.vmem [resolvable:$true] %s33_s10 }
   0x5   :  { %p755_p1 = scmp.lt.u32.totalorder %s751_s13, %s1083_s1 }
   0x7   :  { %p757_p2 = pnand %p755_p1, %p752_p0 }
   0x9   :  { %760 = shalt.err (!%p757_p2)
}
   0xa   :  { %s761_s18 = scalar_lea.vmem %s34_s10, 512  ;;  %p766_p4 = scmp.lt.s32.totalorder %s34_s10, %s34_s10 }
   0xb   :  { %p762_p3 = scmp.ne.s32.totalorder %s34_s10, %s761_s18  ;;  %p767_p5 = scmp.lt.s32.totalorder %s761_s18, %s761_s18 }
   0xd   :  { %p768_p6 = por %p767_p5, %p766_p4 }
   0xf   :  { %p769_p7 = pnand %p768_p6, %p762_p3 }
  0x11   :  { %772 = shalt.err (!%p769_p7)
}
  0x12   :  { %s892_s19 = smov 128   ;;  %s893_s20 = smov 8  }
  0x13   :  { %39 = dma.hbm_to_vmem [thread:$0]  %s1083_s1, 512, %s34_s10, [#allocation6], %s892_s19, %s892_s19, %s893_s20  }
  0x14   :  { %s894_s23 = smov [#allocation8]   ;;  %s895_s25 = smov [#allocation2]  }
  0x15   :  { %s61_s24 = sshll.u32 %s894_s23, 4  ;;  %s24_s26 = sshll.u32 %s895_s25, 4  ;;  %s62_s24 = int_to_ptr.vmem [resolvable:$true] %s61_s24  ;;  %s25_s26 = int_to_ptr.vmem [resolvable:$true] %s24_s26 }
  0x16   :  { %s773_s29 = scalar_lea.hbm %s1087_s5, 2048 }
  0x17   :  { %p774_p8 = scmp.ne.s32.totalorder %s1087_s5, %s773_s29  ;;  %p777_p9 = scmp.lt.u32.totalorder %s773_s29, %s1087_s5 }
  0x19   :  { %p779_p10 = pnand %p777_p9, %p774_p8 }
  0x1b   :  { %782 = shalt.err (!%p779_p10)
}
  0x1c   :  { %s783_s1 = scalar_lea.vmem %s62_s24, 2048  ;;  %p788_p12 = scmp.lt.s32.totalorder %s62_s24, %s62_s24 }
  0x1d   :  { %p784_p11 = scmp.ne.s32.totalorder %s62_s24, %s783_s1  ;;  %p789_p13 = scmp.lt.s32.totalorder %s783_s1, %s783_s1 }
  0x1f   :  { %p790_p0 = por %p789_p13, %p788_p12 }
  0x21   :  { %p791_p1 = pnand %p790_p0, %p784_p11 }
  0x23   :  { %794 = shalt.err (!%p791_p1)
}
  0x24   :  { %67 = dma.hbm_to_vmem [thread:$0]  %s1087_s5, 2048, %s62_s24, [#allocation9], %s892_s19, %s892_s19, %s893_s20  }
  0x25   :  { %s795_s17 = scalar_lea.hbm %s1082_s0, 64 }
  0x26   :  { %p796_p2 = scmp.ne.s32.totalorder %s1082_s0, %s795_s17  ;;  %p799_p3 = scmp.lt.u32.totalorder %s795_s17, %s1082_s0 }
  0x28   :  { %p801_p4 = pnand %p799_p3, %p796_p2 }
  0x2a   :  { %804 = shalt.err (!%p801_p4)
}
  0x2b   :  { %s805_s25 = scalar_lea.vmem %s25_s26, 64  ;;  %p810_p6 = scmp.lt.s32.totalorder %s25_s26, %s25_s26 }
  0x2c   :  { %p806_p5 = scmp.ne.s32.totalorder %s25_s26, %s805_s25  ;;  %p811_p7 = scmp.lt.s32.totalorder %s805_s25, %s805_s25 }
  0x2e   :  { %p812_p8 = por %p811_p7, %p810_p6 }
  0x30   :  { %p813_p9 = pnand %p812_p8, %p806_p5 }
  0x32   :  { %816 = shalt.err (!%p813_p9)
}
  0x33   :  { %27 = dma.hbm_to_vmem [thread:$0]  %s1082_s0, 64, %s25_s26, [#allocation3]  }
  0x34   :  { %s896_s27 = smov [#allocation7]   ;;  %s897_s29 = smov [#allocation10]  }
  0x35   :  { %s47_s28 = sshll.u32 %s896_s27, 4  ;;  %s75_s30 = sshll.u32 %s897_s29, 4  ;;  %s48_s28 = int_to_ptr.vmem [resolvable:$true] %s47_s28  ;;  %s76_s30 = int_to_ptr.vmem [resolvable:$true] %s75_s30 }
  0x36   :  { %s817_s13 = scalar_lea.hbm %s1085_s3, 2048 }
  0x37   :  { %p818_p10 = scmp.ne.s32.totalorder %s1085_s3, %s817_s13  ;;  %p821_p11 = scmp.lt.u32.totalorder %s817_s13, %s1085_s3 }
  0x39   :  { %p823_p12 = pnand %p821_p11, %p818_p10 }
  0x3b   :  { %826 = shalt.err (!%p823_p12)
}
  0x3c   :  { %s827_s0 = scalar_lea.vmem %s48_s28, 2048  ;;  %p832_p0 = scmp.lt.s32.totalorder %s48_s28, %s48_s28 }
  0x3d   :  { %p828_p13 = scmp.ne.s32.totalorder %s48_s28, %s827_s0  ;;  %p833_p1 = scmp.lt.s32.totalorder %s827_s0, %s827_s0 }
  0x3f   :  { %p834_p2 = por %p833_p1, %p832_p0 }
  0x41   :  { %p835_p3 = pnand %p834_p2, %p828_p13 }
  0x43   :  { %838 = shalt.err (!%p835_p3)
}
  0x44   :  { %53 = dma.hbm_to_vmem [thread:$0]  %s1085_s3, 2048, %s48_s28, [#allocation6], %s892_s19, %s892_s19, %s893_s20  }
  0x45   :  { %s839_s21 = scalar_lea.hbm %s1089_s7, 2048 }
  0x46   :  { %p840_p4 = scmp.ne.s32.totalorder %s1089_s7, %s839_s21  ;;  %p843_p5 = scmp.lt.u32.totalorder %s839_s21, %s1089_s7 }
  0x48   :  { %p845_p6 = pnand %p843_p5, %p840_p4 }
  0x4a   :  { %848 = shalt.err (!%p845_p6)
}
  0x4b   :  { %s849_s24 = scalar_lea.vmem %s76_s30, 2048  ;;  %p854_p8 = scmp.lt.s32.totalorder %s76_s30, %s76_s30 }
  0x4c   :  { %p850_p7 = scmp.ne.s32.totalorder %s76_s30, %s849_s24  ;;  %p855_p9 = scmp.lt.s32.totalorder %s849_s24, %s849_s24 }
  0x4e   :  { %p856_p10 = por %p855_p9, %p854_p8 }
  0x50   :  { %p857_p11 = pnand %p856_p10, %p850_p7 }
  0x52   :  { %860 = shalt.err (!%p857_p11)
}
  0x53   :  { %81 = dma.hbm_to_vmem [thread:$0]  %s1089_s7, 2048, %s76_s30, [#allocation9], %s892_s19, %s892_s19, %s893_s20  }
  0x54   :  { %883 = dma.done.wait [#allocation3], 64  }
  0x55   :  { %884 = vsyncadd [#allocation3], 4294967232 }
  0x56   :  { %885 = dma.done.wait [#allocation6], 2560  }
  0x57   :  { %886 = vsyncadd [#allocation6], 4294964736 }
  0x58   :  { %887 = dma.done.wait [#allocation9], 4096  }
  0x59   :  { %888 = vsyncadd [#allocation9], 4294963200  ;;  %v898_v0 = vmov 0.0|0.0   ;;  %vm899_vm0 = vmmov 0   ;;  %v900_v1 = vmov 0.0   ;;  %v100_v2 = vld [vmem:[#allocation5] sm:$0xff] }
  0x5a   :  { %662 = vmatprep.subr.bf16.mxu0 %v898_v0  ;;  %554 = vmatprep.mubr.msk.f32.mxu0 %vm899_vm0, %v900_v1  ;;  %v101_v3 = vld [vmem:[#allocation5 + $0x8] sm:$0xff]  ;;  %v102_v4 = vld [vmem:[#allocation5 + $0x10] sm:$0xff]  ;;  %v103_v6 = vld [vmem:[#allocation5 + $0x18] sm:$0xff]  ;;  %vm111_vm1 = vcmask 261120   ;;  %s901_s11 = smov [#allocation11]  }
  0x5b   :  { %668 = vmatprep.subr.bf16.mxu1 %v898_v0  ;;  %589 = vmatprep.mubr.msk.f32.mxu1 %vm899_vm0, %v900_v1  ;;  %v663_v5 = vpack.c.bf16 %v101_v3, %v100_v2  ;;  %v186_v7 = vld [vmem:[#allocation7] sm:$0xff]  ;;  %v187_v8 = vld [vmem:[#allocation7 + $0x8] sm:$0xff]  ;;  %v188_v9 = vld [vmem:[#allocation7 + $0x10] sm:$0xff]  ;;  %v666_v11 = vpack.c.bf16 %v103_v6, %v102_v4  ;;  %s474_s12 = sshll.u32 %s901_s11, 4  ;;  %s475_s12 = int_to_ptr.vmem [resolvable:$true] %s474_s12 }
  0x5c   :  { %v189_v10 = vld [vmem:[#allocation7 + $0x18] sm:$0xff]  ;;  %v669_v12 = vpack.c.bf16 %v187_v8, %v186_v7  ;;  %v190_v14 = vld [vmem:[#allocation7 + $0x20] sm:$0xff]  ;;  %v191_v15 = vld [vmem:[#allocation7 + $0x28] sm:$0xff]  ;;  %s861_s13 = scalar_lea.vmem %s475_s12, 64  ;;  %p866_p13 = scmp.lt.s32.totalorder %s475_s12, %s475_s12 }
  0x5d   :  { %664 = vmatpush3.bf16.msra.mxu0 %v663_v5  ;;  %v672_v13 = vpack.c.bf16 %v189_v10, %v188_v9  ;;  %v99_v16 = vld [vmem:[#allocation2] sm:$0xf]  ;;  %v675_v17 = vpack.c.bf16 %v191_v15, %v190_v14  ;;  %v192_v18 = vld [vmem:[#allocation7 + $0x30] sm:$0xff]  ;;  %v194_v21 = vld [vmem:[#allocation7 + $0x40] sm:$0xff]  ;;  %p862_p12 = scmp.ne.s32.totalorder %s475_s12, %s861_s13  ;;  %p867_p0 = scmp.lt.s32.totalorder %s861_s13, %s861_s13 }
  0x5e   :  { %665 = vmatprep.subr.bf16.mxu0 %v898_v0  ;;  %670 = vmatpush3.bf16.msra.mxu1 %v669_v12  ;;  %v193_v19 = vld [vmem:[#allocation7 + $0x38] sm:$0xff]  ;;  %v195_v22 = vld [vmem:[#allocation7 + $0x48] sm:$0xff]  ;;  %v196_v24 = vld [vmem:[#allocation7 + $0x50] sm:$0xff] }
  0x5f   :  { %671 = vmatprep.subr.bf16.mxu1 %v898_v0  ;;  %v678_v20 = vpack.c.bf16 %v193_v19, %v192_v18  ;;  %v681_v23 = vpack.c.bf16 %v195_v22, %v194_v21  ;;  %v197_v25 = vld [vmem:[#allocation7 + $0x58] sm:$0xff]  ;;  %v198_v27 = vld [vmem:[#allocation7 + $0x60] sm:$0xff]  ;;  %v199_v28 = vld [vmem:[#allocation7 + $0x68] sm:$0xff]  ;;  %p868_p1 = por %p867_p0, %p866_p13 }
  0x60   :  { %v684_v26 = vpack.c.bf16 %v197_v25, %v196_v24  ;;  %v687_v29 = vpack.c.bf16 %v199_v28, %v198_v27  ;;  %v200_v30 = vld [vmem:[#allocation7 + $0x70] sm:$0xff]  ;;  %v201_v31 = vld [vmem:[#allocation7 + $0x78] sm:$0xff]  ;;  %v280_v33 = vld [vmem:[#allocation8] sm:$0xff] }
  0x61   :  { %667 = vmatpush3.bf16.msra.mxu0 %v666_v11  ;;  %v690_v32 = vpack.c.bf16 %v201_v31, %v200_v30  ;;  %v281_v34 = vld [vmem:[#allocation8 + $0x8] sm:$0xff]  ;;  %v282_v35 = vld [vmem:[#allocation8 + $0x10] sm:$0xff]  ;;  %v283_v37 = vld [vmem:[#allocation8 + $0x18] sm:$0xff]  ;;  %p869_p2 = pnand %p868_p1, %p862_p12 }
  0x62   :  { %692 = vmatprep.subr.bf16.mxu0 %v898_v0  ;;  %673 = vmatpush3.bf16.msra.mxu1 %v672_v13  ;;  %v693_v36 = vpack.c.bf16 %v281_v34, %v280_v33  ;;  %v696_v38 = vpack.c.bf16 %v283_v37, %v282_v35  ;;  %v284_v39 = vld [vmem:[#allocation8 + $0x20] sm:$0xff]  ;;  %v285_v40 = vld [vmem:[#allocation8 + $0x28] sm:$0xff]  ;;  %v286_v42 = vld [vmem:[#allocation8 + $0x30] sm:$0xff] }
  0x63   :  { %674 = vmatprep.subr.bf16.mxu1 %v898_v0  ;;  %v699_v41 = vpack.c.bf16 %v285_v40, %v284_v39  ;;  %v287_v43 = vld [vmem:[#allocation8 + $0x38] sm:$0xff]  ;;  %v288_v45 = vld [vmem:[#allocation8 + $0x40] sm:$0xff]  ;;  %v289_v46 = vld [vmem:[#allocation8 + $0x48] sm:$0xff] }
  0x64   :  { %555 = vmatmul.mubr.msk.f32.vlgmr.msra.gmra.mrb[0].mxu0 %vm111_vm1, %v99_v16  ;;  %v702_v44 = vpack.c.bf16 %v287_v43, %v286_v42  ;;  %v705_v47 = vpack.c.bf16 %v289_v46, %v288_v45  ;;  %v290_v48 = vld [vmem:[#allocation8 + $0x50] sm:$0xff]  ;;  %v291_v49 = vld [vmem:[#allocation8 + $0x58] sm:$0xff]  ;;  %v292_v51 = vld [vmem:[#allocation8 + $0x60] sm:$0xff] }
  0x65   :  { %624 = vmatprep.mubr.msk.f32.mxu0 %vm899_vm0, %v900_v1  ;;  %694 = vmatpush3.bf16.msra.mxu0 %v693_v36  ;;  %v708_v50 = vpack.c.bf16 %v291_v49, %v290_v48  ;;  %v293_v52 = vld [vmem:[#allocation8 + $0x68] sm:$0xff]  ;;  %v485_v54 = vld [vmem:[%s1084_s2] ss:$0 sm:$0xff]  ;;  %v294_v59 = vld [vmem:[#allocation8 + $0x70] sm:$0xff] }
  0x66   :  { %676 = vmatpush3.bf16.msra.mxu1 %v675_v17  ;;  %695 = vmatprep.subr.bf16.mxu0 %v898_v0  ;;  %v711_v53 = vpack.c.bf16 %v293_v52, %v292_v51  ;;  %v295_v60 = vld [vmem:[#allocation8 + $0x78] sm:$0xff]  ;;  %v374_v62 = vld [vmem:[#allocation10] sm:$0xff]  ;;  %v375_v63 = vld [vmem:[#allocation10 + $0x8] sm:$0xff] }
  0x67   :  { %677 = vmatprep.subr.bf16.mxu1 %v898_v0  ;;  %v714_v61 = vpack.c.bf16 %v295_v60, %v294_v59  ;;  %v376_v2 = vld [vmem:[#allocation10 + $0x10] sm:$0xff]  ;;  %v717_v3 = vpack.c.bf16 %v375_v63, %v374_v62  ;;  %v377_v4 = vld [vmem:[#allocation10 + $0x18] sm:$0xff]  ;;  %v378_v6 = vld [vmem:[#allocation10 + $0x20] sm:$0xff] }
  0x68   :  { %v720_v5 = vpack.c.bf16 %v377_v4, %v376_v2  ;;  %v379_v7 = vld [vmem:[#allocation10 + $0x28] sm:$0xff]  ;;  %v381_v9 = vld [vmem:[#allocation10 + $0x38] sm:$0xff]  ;;  %v382_v11 = vld [vmem:[#allocation10 + $0x40] sm:$0xff] }
  0x69   :  { %697 = vmatpush3.bf16.msra.mxu0 %v696_v38  ;;  %v723_v8 = vpack.c.bf16 %v379_v7, %v378_v6  ;;  %v383_v12 = vld [vmem:[#allocation10 + $0x48] sm:$0xff]  ;;  %v384_v14 = vld [vmem:[#allocation10 + $0x50] sm:$0xff]  ;;  %v385_v15 = vld [vmem:[#allocation10 + $0x58] sm:$0xff] }
  0x6a   :  { %679 = vmatpush3.bf16.msra.mxu1 %v678_v20  ;;  %698 = vmatprep.subr.bf16.mxu0 %v898_v0  ;;  %v729_v13 = vpack.c.bf16 %v383_v12, %v382_v11  ;;  %v732_v16 = vpack.c.bf16 %v385_v15, %v384_v14  ;;  %v386_v17 = vld [vmem:[#allocation10 + $0x60] sm:$0xff]  ;;  %v387_v18 = vld [vmem:[#allocation10 + $0x68] sm:$0xff]  ;;  %v487_v20 = vld [vmem:[%s1086_s4] ss:$0 sm:$0xff] }
  0x6b   :  { %680 = vmatprep.subr.bf16.mxu1 %v898_v0  ;;  %v735_v19 = vpack.c.bf16 %v387_v18, %v386_v17  ;;  %v388_v25 = vld [vmem:[#allocation10 + $0x70] sm:$0xff]  ;;  %v488_v28 = vld [vmem:[%s1088_s6] ss:$0 sm:$0xff] }
  0x6d   :  { %700 = vmatpush3.bf16.msra.mxu0 %v699_v41 }
  0x6e   :  { %682 = vmatpush3.bf16.msra.mxu1 %v681_v23  ;;  %701 = vmatprep.subr.bf16.mxu0 %v898_v0 }
  0x6f   :  { %683 = vmatprep.subr.bf16.mxu1 %v898_v0 }
  0x71   :  { %703 = vmatpush3.bf16.msra.mxu0 %v702_v44 }
  0x72   :  { %685 = vmatpush3.bf16.msra.mxu1 %v684_v26  ;;  %704 = vmatprep.subr.bf16.mxu0 %v898_v0  ;;  %v389_v26 = vld [vmem:[#allocation10 + $0x78] sm:$0xff] }
  0x73   :  { %686 = vmatprep.subr.bf16.mxu1 %v898_v0  ;;  %v738_v27 = vpack.c.bf16 %v389_v26, %v388_v25 }
  0x75   :  { %706 = vmatpush3.bf16.msra.mxu0 %v705_v47 }
  0x76   :  { %688 = vmatpush3.bf16.msra.mxu1 %v687_v29  ;;  %707 = vmatprep.subr.bf16.mxu0 %v898_v0 }
  0x77   :  { %689 = vmatprep.subr.bf16.mxu1 %v898_v0 }
  0x79   :  { %709 = vmatpush3.bf16.msra.mxu0 %v708_v50 }
  0x7a   :  { %691 = vmatpush3.bf16.msra.mxu1 %v690_v32  ;;  %710 = vmatprep.subr.bf16.mxu0 %v898_v0  ;;  %v489_v32 = vld [vmem:[%s1090_s8] ss:$0 sm:$0xff] }
  0x7b   :  { %716 = vmatprep.subr.bf16.mxu1 %v898_v0 }
  0x7d   :  { %712 = vmatpush3.bf16.msra.mxu0 %v711_v53 }
  0x7e   :  { %713 = vmatprep.subr.bf16.mxu0 %v898_v0 }
  0x81   :  { %715 = vmatpush3.bf16.msra.mxu0 %v714_v61 }
 0x137   :  { %v181_v55 = vpop.f32.mrb[0].mxu0 }
 0x138   :  { %v182_v56 = vadd.f32 %v485_v54, %v181_v55  ;;  %v556_v57 = vpop.f32.mrb[1].mxu0 }
 0x13a   :  { %v185_v58 = vmax.f32 %v182_v56, 0.0 }
 0x13c   :  { %590 = vmatmul.mubr.f32.vlgmr.msra.gmra.mrb[0].mxu1 %v185_v58 }
 0x13d   :  { %659 = vmatprep.mubr.msk.f32.mxu1 %vm899_vm0, %v900_v1  ;;  %718 = vmatpush3.bf16.msra.mxu1 %v717_v3  ;;  %v380_v1 = vld [vmem:[#allocation10 + $0x30] sm:$0xff] }
 0x13e   :  { %719 = vmatprep.subr.bf16.mxu1 %v898_v0  ;;  %v726_v10 = vpack.c.bf16 %v381_v9, %v380_v1 }
 0x141   :  { %721 = vmatpush3.bf16.msra.mxu1 %v720_v5 }
 0x142   :  { %722 = vmatprep.subr.bf16.mxu1 %v898_v0 }
 0x145   :  { %724 = vmatpush3.bf16.msra.mxu1 %v723_v8 }
 0x146   :  { %725 = vmatprep.subr.bf16.mxu1 %v898_v0 }
 0x149   :  { %727 = vmatpush3.bf16.msra.mxu1 %v726_v10 }
 0x14a   :  { %728 = vmatprep.subr.bf16.mxu1 %v898_v0 }
 0x14d   :  { %730 = vmatpush3.bf16.msra.mxu1 %v729_v13 }
 0x14e   :  { %731 = vmatprep.subr.bf16.mxu1 %v898_v0 }
 0x151   :  { %733 = vmatpush3.bf16.msra.mxu1 %v732_v16 }
 0x152   :  { %734 = vmatprep.subr.bf16.mxu1 %v898_v0 }
 0x155   :  { %736 = vmatpush3.bf16.msra.mxu1 %v735_v19 }
 0x156   :  { %737 = vmatprep.subr.bf16.mxu1 %v898_v0 }
 0x159   :  { %739 = vmatpush3.bf16.msra.mxu1 %v738_v27 }
 0x20f   :  { %v275_v21 = vpop.f32.mrb[0].mxu1 }
 0x210   :  { %v276_v22 = vadd.f32 %v487_v20, %v275_v21  ;;  %v591_v23 = vpop.f32.mrb[1].mxu1 }
 0x212   :  { %v279_v24 = vmax.f32 %v276_v22, 0.0 }
 0x214   :  { %625 = vmatmul.mubr.f32.vlgmr.msra.gmra.mrb[2].mxu0 %v279_v24 }
 0x2e7   :  { %v369_v29 = vpop.f32.mrb[2].mxu0 }
 0x2e8   :  { %v370_v30 = vadd.f32 %v488_v28, %v369_v29  ;;  %v626_v0 = vpop.f32.mrb[3].mxu0 }
 0x2ea   :  { %v373_v31 = vmax.f32 %v370_v30, 0.0 }
 0x2ec   :  { %660 = vmatmul.mubr.f32.vlgmr.msra.gmra.mrb[2].mxu1 %v373_v31 }
 0x3bf   :  { %v463_v33 = vpop.f32.mrb[2].mxu1 }
 0x3c0   :  { %v464_v34 = vadd.f32 %v489_v32, %v463_v33  ;;  %v661_v35 = vpop.f32.mrb[3].mxu1 }
 0x3c2   :  { %467 = vst [vmem:[#allocation11] sm:$0xf] %v464_v34 }
 0x3c3   :  { %872 = shalt.err (!%p869_p2)
}
 0x3c4   :  { %s873_s10 = scalar_lea.hbm %s1091_s9, 64 }
 0x3c5   :  { %p874_p3 = scmp.ne.s32.totalorder %s1091_s9, %s873_s10  ;;  %p877_p4 = scmp.lt.u32.totalorder %s873_s10, %s1091_s9 }
 0x3c7   :  { %p879_p5 = pnand %p877_p4, %p874_p3 }
 0x3c9   :  { %882 = shalt.err (!%p879_p5)
}
 0x3ca   :  { %477 = dma.vmem_to_hbm [thread:$0]  %s475_s12, 64, %s1091_s9, [#allocation4]  }
 0x3cb   :  { %889 = dma.done.wait [#allocation4], 64  }
 0x3cc   :  { %890 = vsyncadd [#allocation4], 4294967232 }
 0x3cd   :  { %481 = vsyncpa [#allocation3], 1 }
 0x3ce   :  { %482 = vsyncpa [#allocation6], 1 }
 0x3cf   :  { %483 = vsyncpa [#allocation9], 1 }
 0x3d0   :  { %484 = vsyncpa [#allocation4], 1 }

</bundles_post_ra>
